<compile_context>
chip_gen: v6e
topology: v6e:2x2x1
jax: 0.10.0
libtpu: 0.0.40
codegen_flags: <defaults>
</compile_context>

<pallas_src>
import jax
import jax.numpy as jnp
from jax import lax
from jax.experimental import pallas as pl
from jax.experimental.pallas import tpu as pltpu


LN_EPS = 1e-5          # PyTorch nn.LayerNorm default
LANE = 128
SUBLANE = 8


def _round_up(x, m):
    return ((x + m - 1) // m) * m


def _pad2(a, rows, cols):
    return jnp.pad(a, ((0, rows - a.shape[0]), (0, cols - a.shape[1])))


def _pad_row(a, cols):
    return jnp.pad(a, ((0, 0), (0, cols - a.shape[1])))


def _layer_norm_exact(x, gamma, beta, eps=LN_EPS):
    """Two-pass LayerNorm on an unpadded last axis (exact torch semantics)."""
    mean = jnp.mean(x, axis=-1, keepdims=True)
    centered = x - mean
    var = jnp.mean(centered * centered, axis=-1, keepdims=True)
    return centered * lax.rsqrt(var + eps) * gamma + beta


def _layer_norm_masked(x, gamma, beta, valid, eps=LN_EPS):
    """Two-pass LayerNorm over the first `valid` lanes of a lane-padded tensor.

    `x` is [TB, D_pad] f32 whose lanes >= `valid` are exactly zero (zero weight
    columns + zero bias in the padded region), so sum(x) over all lanes is the
    exact sum over the valid lanes.  The centered values are masked before the
    variance pass, giving the numerically-stable two-pass statistics.  gamma /
    beta are zero in padded lanes, so padded lanes stay exactly zero on output.
    """
    d_pad = x.shape[-1]
    inv_n = 1.0 / float(valid)
    mean = jnp.sum(x, axis=-1, keepdims=True) * inv_n
    centered = x - mean
    if d_pad != valid:
        lane = lax.broadcasted_iota(jnp.int32, x.shape, dimension=x.ndim - 1)
        centered = jnp.where(lane < valid, centered, 0.0)
    var = jnp.sum(centered * centered, axis=-1, keepdims=True) * inv_n
    return centered * lax.rsqrt(var + eps) * gamma + beta


def _make_kernel(num_hidden, ln_valid):
    """Fused forward kernel.  ln_valid[l] = valid width of hidden LN l."""

    def kernel(*refs):
        # refs: x, fn_ln(2,obs), [w, ln3(3,pad)]*L, w_final, b_final, out
        idx = 0
        x = refs[idx][...].astype(jnp.float32); idx += 1
        fn_ln = refs[idx][...]; idx += 1
        fn_g = fn_ln[0:1, :]
        fn_b = fn_ln[1:2, :]

        # Feature norm over the native (unpadded) observation width: exact.
        h = _layer_norm_exact(x, fn_g, fn_b)

        for layer in range(num_hidden):
            w = refs[idx][...]            # bf16, lane-padded columns
            ln3 = refs[idx + 1][...]      # f32 (3, pad): bias, gamma, beta
            idx += 2
            b, g, be = ln3[0:1, :], ln3[1:2, :], ln3[2:3, :]
            h = jnp.dot(h.astype(jnp.bfloat16), w,
                        preferred_element_type=jnp.float32) + b
            h = _layer_norm_masked(h, g, be, ln_valid[layer])
            h = jnp.maximum(h, 0.0)

        wf = refs[idx][...]               # bf16 (last_pad, out_size)
        fbias = refs[idx + 1][...]        # f32  (1, out_size)
        idx += 2
        out_ref = refs[idx]
        out = jnp.dot(h.astype(jnp.bfloat16), wf,
                      preferred_element_type=jnp.float32) + fbias
        out_ref[...] = out.astype(out_ref.dtype)

    return kernel


def init_params(key, observation_size, hidden_state_size, fc_layers):
    """Deterministic synthetic parameters (shapes match the torch module), f32."""
    params = {}
    k = key

    def nxt():
        nonlocal k
        k, sub = jax.random.split(k)
        return sub

    params["fn_gamma"] = jnp.ones((1, observation_size), jnp.float32)
    params["fn_beta"] = jnp.zeros((1, observation_size), jnp.float32)

    layers = []
    in_size = observation_size
    for out_size in fc_layers:
        w = jax.random.uniform(nxt(), (in_size, out_size), jnp.float32,
                               minval=-0.1, maxval=0.1)
        b = jax.random.uniform(nxt(), (1, out_size), jnp.float32,
                               minval=-0.1, maxval=0.1)
        g = jnp.ones((1, out_size), jnp.float32)
        be = jnp.zeros((1, out_size), jnp.float32)
        layers.append((w, b, g, be))
        in_size = out_size
    params["hidden"] = layers

    params["wf"] = jax.random.uniform(nxt(), (in_size, hidden_state_size),
                                      jnp.float32, minval=-0.1, maxval=0.1)
    params["bf"] = jax.random.uniform(nxt(), (1, hidden_state_size),
                                      jnp.float32, minval=-0.1, maxval=0.1)
    return params


def prepare_params(params):
    """Stack LN params, lane-pad only the *hidden* feature dims, weights -> bf16.

    The observation and hidden_state_size dims are left at native width (they
    stream from/to HBM); only interior hidden widths are padded to 128 lanes so
    every interior matmul / LN tile is lane-dense.  Weight K-rows and the
    bias/gamma/beta columns in the padded region are zero.
    """
    obs = params["fn_gamma"].shape[-1]
    hidden_widths = [w.shape[1] for (w, _, _, _) in params["hidden"]]
    out_size = params["wf"].shape[1]
    hidden_pad = [_round_up(h, LANE) for h in hidden_widths]

    flat = [jnp.concatenate([params["fn_gamma"], params["fn_beta"]],
                            axis=0).astype(jnp.float32)]          # (2, obs)
    in_dim = obs
    for (w, b, g, be), hpad in zip(params["hidden"], hidden_pad):
        flat.append(_pad2(w, in_dim, hpad).astype(jnp.bfloat16))
        ln3 = jnp.concatenate([b, g, be], axis=0)                 # (3, hidden)
        flat.append(_pad_row(ln3, hpad).astype(jnp.float32))      # (3, hpad)
        in_dim = hpad
    flat.append(_pad2(params["wf"], in_dim, out_size).astype(jnp.bfloat16))
    flat.append(params["bf"].astype(jnp.float32))                 # (1, out_size)

    meta = dict(
        obs_size=obs,
        out_size=out_size,
        num_hidden=len(hidden_widths),
        ln_valid=tuple(hidden_widths),   # static valid widths per hidden LN
    )
    return flat, meta


def representation_network_forward(observation, flat_params, meta, *,
                                   max_batch_tile=None,
                                   vmem_budget_bytes=None,
                                   vmem_limit_bytes=None):
    batch, obs = observation.shape
    out_size = meta["out_size"]
    num_hidden = meta["num_hidden"]

    # ---- generation-aware VMEM sizing (v7x: 64 MiB/TC, v5e/v6e: 128 MiB) ----
    phys_vmem = 64 * 1024 * 1024          # conservative fallback (v7x-safe)
    try:
        info = pltpu.get_tpu_info()
        phys_vmem = int(getattr(info, "vmem_capacity_bytes", phys_vmem))
    except Exception:
        pass
    if vmem_budget_bytes is None:
        vmem_budget_bytes = (phys_vmem * 5) // 8       # 40 MiB / 80 MiB
    if vmem_limit_bytes is None:
        vmem_limit_bytes = (phys_vmem * 3) // 4        # 48 MiB / 96 MiB
    if max_batch_tile is None:
        max_batch_tile = 512 if phys_vmem <= 64 * 1024 * 1024 else 1024

    # ---- batch tile selection -------------------------------------------
    param_bytes = sum(int(a.size) * a.dtype.itemsize for a in flat_params)
    widest = max([obs, out_size] + [a.shape[-1] for a in flat_params])

    def vmem_estimate(tb):
        # x / out tiles are double-buffered by the pipeline; parameter operands
        # are single-buffered (pl.Buffered(1)); plus live-activation headroom.
        io = 2 * 2 * tb * (obs + out_size) * 4
        act = 4 * tb * widest * 4
        return param_bytes + io + act

    tb = min(max_batch_tile, _round_up(batch, SUBLANE))
    while tb > SUBLANE and vmem_estimate(tb) > vmem_budget_bytes:
        tb //= 2
    tb = max(_round_up(tb, SUBLANE), SUBLANE)

    batch_pad = _round_up(batch, tb)
    # Guarantee >=2 grid steps on large batches so the "parallel" axis can be
    # sharded across both v7x TensorCores (keep tiles >= 256 rows).
    if batch_pad // tb < 2 and batch >= 512:
        tb = _round_up((batch + 1) // 2, SUBLANE)
        batch_pad = 2 * tb

    x = observation.astype(jnp.float32)
    if batch_pad != batch:               # cheap batch-row pad only; no lane pad
        x = jnp.pad(x, ((0, batch_pad - batch), (0, 0)))

    grid = (batch_pad // tb,)
    kernel = _make_kernel(num_hidden, meta["ln_valid"])

    # Advisory cost estimate (matmul flops, one rsqrt per row per LN).
    mm_flops = 0
    for a in flat_params:
        if a.dtype == jnp.bfloat16:      # the weight matrices
            mm_flops += 2 * batch_pad * a.shape[0] * a.shape[1]
    cost = pl.CostEstimate(
        flops=int(mm_flops),
        transcendentals=int(batch_pad * (num_hidden + 1)),
        bytes_accessed=int(batch_pad * obs * 4 + batch_pad * out_size * 4
                           + param_bytes),
    )

    def build(single_buffer_params):
        def const_spec(shape):
            if single_buffer_params:
                return pl.BlockSpec(shape, lambda i: (0, 0),
                                    pipeline_mode=pl.Buffered(1))
            return pl.BlockSpec(shape, lambda i: (0, 0))

        in_specs = [pl.BlockSpec((tb, obs), lambda i: (i, 0))]
        in_specs += [const_spec(a.shape) for a in flat_params]
        out_specs = pl.BlockSpec((tb, out_size), lambda i: (i, 0))

        return pl.pallas_call(
            kernel,
            out_shape=jax.ShapeDtypeStruct((batch_pad, out_size), jnp.float32),
            grid=grid,
            in_specs=in_specs,
            out_specs=out_specs,
            compiler_params=pltpu.CompilerParams(
                dimension_semantics=("parallel",),
                vmem_limit_bytes=int(vmem_limit_bytes),
            ),
            cost_estimate=cost,
        )

    try:
        out = build(True)(x, *flat_params)
    except Exception:
        # Fallback for runtimes without single-buffered pipeline_mode support.
        out = build(False)(x, *flat_params)

    if batch_pad != batch:
        out = out[:batch]
    return out


def representation_network_ref(observation, params):
    """Pure-JAX reference with matching numerics (bf16 matmul inputs, f32 accum,
    f32 two-pass LayerNorm a la torch)."""
    def ln(x, g, b):
        mean = jnp.mean(x, axis=-1, keepdims=True)
        var = jnp.mean((x - mean) ** 2, axis=-1, keepdims=True)
        return (x - mean) * lax.rsqrt(var + LN_EPS) * g + b

    h = ln(observation.astype(jnp.float32), params["fn_gamma"], params["fn_beta"])
    for (w, b, g, be) in params["hidden"]:
        h = jnp.dot(h.astype(jnp.bfloat16), w.astype(jnp.bfloat16),
                    preferred_element_type=jnp.float32) + b
        h = ln(h, g, be)
        h = jnp.maximum(h, 0.0)
    return jnp.dot(h.astype(jnp.bfloat16), params["wf"].astype(jnp.bfloat16),
                   preferred_element_type=jnp.float32) + params["bf"]


if __name__ == "__main__":
    batch = 8
    observation_size = 32
    hidden_state_size = 32
    fc_layers = [64, 64]

    key = jax.random.PRNGKey(0)
    key, pkey, xkey = jax.random.split(key, 3)

    params = init_params(pkey, observation_size, hidden_state_size, fc_layers)
    observation = jax.random.normal(xkey, (batch, observation_size), jnp.float32)

    flat_params, meta = prepare_params(params)

    out = representation_network_forward(observation, flat_params, meta)
    out = jax.block_until_ready(out)

    ref = representation_network_ref(observation, params)
    assert out.shape == (batch, hidden_state_size)
    assert jnp.all(jnp.isfinite(out)), "non-finite output"
    assert jnp.allclose(out, ref, atol=5e-3, rtol=5e-3), "mismatch vs reference"

    print("KERNEL_OK")
</pallas_src>

<mosaic_0001>
module attributes {stable_mosaic.version = 11 : i64} {
  func.func @kernel(%arg0: i32, %arg1: memref<8x32xf32, #tpu.memory_space<vmem>>, %arg2: memref<2x32xf32, #tpu.memory_space<vmem>>, %arg3: memref<32x128xbf16, #tpu.memory_space<vmem>>, %arg4: memref<3x128xf32, #tpu.memory_space<vmem>>, %arg5: memref<128x128xbf16, #tpu.memory_space<vmem>>, %arg6: memref<3x128xf32, #tpu.memory_space<vmem>>, %arg7: memref<128x32xbf16, #tpu.memory_space<vmem>>, %arg8: memref<1x32xf32, #tpu.memory_space<vmem>>, %arg9: memref<8x32xf32, #tpu.memory_space<vmem>>) attributes {dimension_semantics = [#tpu.dimension_semantics<parallel>], iteration_bounds = array<i64: 1>, scalar_prefetch = 0 : i64, scratch_operands = 0 : i64, tpu.core_type = #tpu.core_type<tc>, window_params = [{transform_indices = @transform_0, window_bounds = array<i64: 8, 32>}, {pipeline_mode = #tpu.pipeline_mode<synchronous>, transform_indices = @transform_1, window_bounds = array<i64: 2, 32>}, {pipeline_mode = #tpu.pipeline_mode<synchronous>, transform_indices = @transform_2, window_bounds = array<i64: 32, 128>}, {pipeline_mode = #tpu.pipeline_mode<synchronous>, transform_indices = @transform_3, window_bounds = array<i64: 3, 128>}, {pipeline_mode = #tpu.pipeline_mode<synchronous>, transform_indices = @transform_4, window_bounds = array<i64: 128, 128>}, {pipeline_mode = #tpu.pipeline_mode<synchronous>, transform_indices = @transform_5, window_bounds = array<i64: 3, 128>}, {pipeline_mode = #tpu.pipeline_mode<synchronous>, transform_indices = @transform_6, window_bounds = array<i64: 128, 32>}, {pipeline_mode = #tpu.pipeline_mode<synchronous>, transform_indices = @transform_7, window_bounds = array<i64: 1, 32>}, {transform_indices = @transform_8, window_bounds = array<i64: 8, 32>}]} {
    %c0 = arith.constant 0 : index
    %c0_0 = arith.constant 0 : index
    %0 = vector.load %arg1[%c0, %c0_0] : memref<8x32xf32, #tpu.memory_space<vmem>>, vector<8x32xf32>
    %c0_1 = arith.constant 0 : index
    %c0_2 = arith.constant 0 : index
    %1 = vector.load %arg2[%c0_1, %c0_2] : memref<2x32xf32, #tpu.memory_space<vmem>>, vector<2x32xf32>
    %2 = vector.extract_strided_slice %1 {offsets = [0, 0], sizes = [1, 32], strides = [1, 1]} : vector<2x32xf32> to vector<1x32xf32>
    %3 = vector.extract_strided_slice %1 {offsets = [1, 0], sizes = [1, 32], strides = [1, 1]} : vector<2x32xf32> to vector<1x32xf32>
    %cst = arith.constant dense<0.000000e+00> : vector<8xf32>
    %4 = vector.multi_reduction <add>, %0, %cst [1] : vector<8x32xf32> to vector<8xf32>
    %5 = vector.shape_cast %4 : vector<8xf32> to vector<8x1xf32>
    %cst_3 = arith.constant 3.200000e+01 : f32
    %6 = vector.broadcast %cst_3 : f32 to vector<8x1xf32>
    %7 = arith.divf %5, %6 : vector<8x1xf32>
    %8 = vector.broadcast %7 : vector<8x1xf32> to vector<8x32xf32>
    %9 = arith.subf %0, %8 : vector<8x32xf32>
    %10 = arith.mulf %9, %9 : vector<8x32xf32>
    %cst_4 = arith.constant dense<0.000000e+00> : vector<8xf32>
    %11 = vector.multi_reduction <add>, %10, %cst_4 [1] : vector<8x32xf32> to vector<8xf32>
    %12 = vector.shape_cast %11 : vector<8xf32> to vector<8x1xf32>
    %cst_5 = arith.constant 3.200000e+01 : f32
    %13 = vector.broadcast %cst_5 : f32 to vector<8x1xf32>
    %14 = arith.divf %12, %13 : vector<8x1xf32>
    %cst_6 = arith.constant 9.99999974E-6 : f32
    %15 = vector.broadcast %cst_6 : f32 to vector<8x1xf32>
    %16 = arith.addf %14, %15 : vector<8x1xf32>
    %17 = math.rsqrt %16 : vector<8x1xf32>
    %18 = vector.broadcast %17 : vector<8x1xf32> to vector<8x32xf32>
    %19 = arith.mulf %9, %18 : vector<8x32xf32>
    %20 = vector.broadcast %2 : vector<1x32xf32> to vector<8x32xf32>
    %21 = arith.mulf %19, %20 : vector<8x32xf32>
    %22 = vector.broadcast %3 : vector<1x32xf32> to vector<8x32xf32>
    %23 = arith.addf %21, %22 : vector<8x32xf32>
    %c0_7 = arith.constant 0 : index
    %c0_8 = arith.constant 0 : index
    %24 = vector.load %arg3[%c0_7, %c0_8] : memref<32x128xbf16, #tpu.memory_space<vmem>>, vector<32x128xbf16>
    %c0_9 = arith.constant 0 : index
    %c0_10 = arith.constant 0 : index
    %25 = vector.load %arg4[%c0_9, %c0_10] : memref<3x128xf32, #tpu.memory_space<vmem>>, vector<3x128xf32>
    %26 = vector.extract_strided_slice %25 {offsets = [0, 0], sizes = [1, 128], strides = [1, 1]} : vector<3x128xf32> to vector<1x128xf32>
    %27 = vector.extract_strided_slice %25 {offsets = [1, 0], sizes = [1, 128], strides = [1, 1]} : vector<3x128xf32> to vector<1x128xf32>
    %28 = vector.extract_strided_slice %25 {offsets = [2, 0], sizes = [1, 128], strides = [1, 1]} : vector<3x128xf32> to vector<1x128xf32>
    %29 = arith.truncf %23 : vector<8x32xf32> to vector<8x32xbf16>
    %cst_11 = arith.constant dense<0.000000e+00> : vector<8x128xf32>
    %30 = tpu.matmul %29, %24, %cst_11 {dimension_numbers = #tpu.dot_dimension_numbers<[1], [0], [0], [1], [0, 0, 1, 1], [], []>} : vector<8x32xbf16>, vector<32x128xbf16>, vector<8x128xf32> -> vector<8x128xf32>
    %31 = vector.broadcast %26 : vector<1x128xf32> to vector<8x128xf32>
    %32 = arith.addf %30, %31 : vector<8x128xf32>
    %cst_12 = arith.constant dense<0.000000e+00> : vector<8xf32>
    %33 = vector.multi_reduction <add>, %32, %cst_12 [1] : vector<8x128xf32> to vector<8xf32>
    %34 = vector.shape_cast %33 : vector<8xf32> to vector<8x1xf32>
    %cst_13 = arith.constant 1.562500e-02 : f32
    %35 = vector.broadcast %cst_13 : f32 to vector<8x1xf32>
    %36 = arith.mulf %34, %35 : vector<8x1xf32>
    %37 = vector.broadcast %36 : vector<8x1xf32> to vector<8x128xf32>
    %38 = arith.subf %32, %37 : vector<8x128xf32>
    %39 = tpu.iota {dimensions = array<i32: 1>} : vector<8x128xi32>
    %c64_i32 = arith.constant 64 : i32
    %40 = vector.broadcast %c64_i32 : i32 to vector<8x128xi32>
    %41 = arith.cmpi slt, %39, %40 : vector<8x128xi32>
    %cst_14 = arith.constant 0.000000e+00 : f32
    %42 = vector.broadcast %cst_14 : f32 to vector<8x128xf32>
    %43 = arith.select %41, %38, %42 : vector<8x128xi1>, vector<8x128xf32>
    %44 = arith.mulf %43, %43 : vector<8x128xf32>
    %cst_15 = arith.constant dense<0.000000e+00> : vector<8xf32>
    %45 = vector.multi_reduction <add>, %44, %cst_15 [1] : vector<8x128xf32> to vector<8xf32>
    %46 = vector.shape_cast %45 : vector<8xf32> to vector<8x1xf32>
    %cst_16 = arith.constant 1.562500e-02 : f32
    %47 = vector.broadcast %cst_16 : f32 to vector<8x1xf32>
    %48 = arith.mulf %46, %47 : vector<8x1xf32>
    %cst_17 = arith.constant 9.99999974E-6 : f32
    %49 = vector.broadcast %cst_17 : f32 to vector<8x1xf32>
    %50 = arith.addf %48, %49 : vector<8x1xf32>
    %51 = math.rsqrt %50 : vector<8x1xf32>
    %52 = vector.broadcast %51 : vector<8x1xf32> to vector<8x128xf32>
    %53 = arith.mulf %43, %52 : vector<8x128xf32>
    %54 = vector.broadcast %27 : vector<1x128xf32> to vector<8x128xf32>
    %55 = arith.mulf %53, %54 : vector<8x128xf32>
    %56 = vector.broadcast %28 : vector<1x128xf32> to vector<8x128xf32>
    %57 = arith.addf %55, %56 : vector<8x128xf32>
    %cst_18 = arith.constant 0.000000e+00 : f32
    %58 = vector.broadcast %cst_18 : f32 to vector<8x128xf32>
    %59 = arith.maximumf %57, %58 : vector<8x128xf32>
    %c0_19 = arith.constant 0 : index
    %c0_20 = arith.constant 0 : index
    %60 = vector.load %arg5[%c0_19, %c0_20] : memref<128x128xbf16, #tpu.memory_space<vmem>>, vector<128x128xbf16>
    %c0_21 = arith.constant 0 : index
    %c0_22 = arith.constant 0 : index
    %61 = vector.load %arg6[%c0_21, %c0_22] : memref<3x128xf32, #tpu.memory_space<vmem>>, vector<3x128xf32>
    %62 = vector.extract_strided_slice %61 {offsets = [0, 0], sizes = [1, 128], strides = [1, 1]} : vector<3x128xf32> to vector<1x128xf32>
    %63 = vector.extract_strided_slice %61 {offsets = [1, 0], sizes = [1, 128], strides = [1, 1]} : vector<3x128xf32> to vector<1x128xf32>
    %64 = vector.extract_strided_slice %61 {offsets = [2, 0], sizes = [1, 128], strides = [1, 1]} : vector<3x128xf32> to vector<1x128xf32>
    %65 = arith.truncf %59 : vector<8x128xf32> to vector<8x128xbf16>
    %cst_23 = arith.constant dense<0.000000e+00> : vector<8x128xf32>
    %66 = tpu.matmul %65, %60, %cst_23 {dimension_numbers = #tpu.dot_dimension_numbers<[1], [0], [0], [1], [0, 0, 1, 1], [], []>} : vector<8x128xbf16>, vector<128x128xbf16>, vector<8x128xf32> -> vector<8x128xf32>
    %67 = vector.broadcast %62 : vector<1x128xf32> to vector<8x128xf32>
    %68 = arith.addf %66, %67 : vector<8x128xf32>
    %cst_24 = arith.constant dense<0.000000e+00> : vector<8xf32>
    %69 = vector.multi_reduction <add>, %68, %cst_24 [1] : vector<8x128xf32> to vector<8xf32>
    %70 = vector.shape_cast %69 : vector<8xf32> to vector<8x1xf32>
    %cst_25 = arith.constant 1.562500e-02 : f32
    %71 = vector.broadcast %cst_25 : f32 to vector<8x1xf32>
    %72 = arith.mulf %70, %71 : vector<8x1xf32>
    %73 = vector.broadcast %72 : vector<8x1xf32> to vector<8x128xf32>
    %74 = arith.subf %68, %73 : vector<8x128xf32>
    %75 = tpu.iota {dimensions = array<i32: 1>} : vector<8x128xi32>
    %c64_i32_26 = arith.constant 64 : i32
    %76 = vector.broadcast %c64_i32_26 : i32 to vector<8x128xi32>
    %77 = arith.cmpi slt, %75, %76 : vector<8x128xi32>
    %cst_27 = arith.constant 0.000000e+00 : f32
    %78 = vector.broadcast %cst_27 : f32 to vector<8x128xf32>
    %79 = arith.select %77, %74, %78 : vector<8x128xi1>, vector<8x128xf32>
    %80 = arith.mulf %79, %79 : vector<8x128xf32>
    %cst_28 = arith.constant dense<0.000000e+00> : vector<8xf32>
    %81 = vector.multi_reduction <add>, %80, %cst_28 [1] : vector<8x128xf32> to vector<8xf32>
    %82 = vector.shape_cast %81 : vector<8xf32> to vector<8x1xf32>
    %cst_29 = arith.constant 1.562500e-02 : f32
    %83 = vector.broadcast %cst_29 : f32 to vector<8x1xf32>
    %84 = arith.mulf %82, %83 : vector<8x1xf32>
    %cst_30 = arith.constant 9.99999974E-6 : f32
    %85 = vector.broadcast %cst_30 : f32 to vector<8x1xf32>
    %86 = arith.addf %84, %85 : vector<8x1xf32>
    %87 = math.rsqrt %86 : vector<8x1xf32>
    %88 = vector.broadcast %87 : vector<8x1xf32> to vector<8x128xf32>
    %89 = arith.mulf %79, %88 : vector<8x128xf32>
    %90 = vector.broadcast %63 : vector<1x128xf32> to vector<8x128xf32>
    %91 = arith.mulf %89, %90 : vector<8x128xf32>
    %92 = vector.broadcast %64 : vector<1x128xf32> to vector<8x128xf32>
    %93 = arith.addf %91, %92 : vector<8x128xf32>
    %cst_31 = arith.constant 0.000000e+00 : f32
    %94 = vector.broadcast %cst_31 : f32 to vector<8x128xf32>
    %95 = arith.maximumf %93, %94 : vector<8x128xf32>
    %c0_32 = arith.constant 0 : index
    %c0_33 = arith.constant 0 : index
    %96 = vector.load %arg7[%c0_32, %c0_33] : memref<128x32xbf16, #tpu.memory_space<vmem>>, vector<128x32xbf16>
    %c0_34 = arith.constant 0 : index
    %c0_35 = arith.constant 0 : index
    %97 = vector.load %arg8[%c0_34, %c0_35] : memref<1x32xf32, #tpu.memory_space<vmem>>, vector<1x32xf32>
    %98 = arith.truncf %95 : vector<8x128xf32> to vector<8x128xbf16>
    %cst_36 = arith.constant dense<0.000000e+00> : vector<8x32xf32>
    %99 = tpu.matmul %98, %96, %cst_36 {dimension_numbers = #tpu.dot_dimension_numbers<[1], [0], [0], [1], [0, 0, 1, 1], [], []>} : vector<8x128xbf16>, vector<128x32xbf16>, vector<8x32xf32> -> vector<8x32xf32>
    %100 = vector.broadcast %97 : vector<1x32xf32> to vector<8x32xf32>
    %101 = arith.addf %99, %100 : vector<8x32xf32>
    %c0_37 = arith.constant 0 : index
    %c0_38 = arith.constant 0 : index
    %102 = vector.load %arg9[%c0_37, %c0_38] : memref<8x32xf32, #tpu.memory_space<vmem>>, vector<8x32xf32>
    tpu.vector_store %arg9[%c0_37, %c0_38], %101 {strides = array<i32>} : memref<8x32xf32, #tpu.memory_space<vmem>>, vector<8x32xf32>,
    return
  }
  func.func @transform_0(%arg0: i32) -> (i32, i32) {
    %c0_i32 = arith.constant 0 : i32
    %c0_i32_0 = arith.constant 0 : i32
    return %arg0, %c0_i32 : i32, i32
  }
  func.func @transform_1(%arg0: i32) -> (i32, i32) {
    %c0_i32 = arith.constant 0 : i32
    %c0_i32_0 = arith.constant 0 : i32
    %c0_i32_1 = arith.constant 0 : i32
    return %c0_i32, %c0_i32_0 : i32, i32
  }
  func.func @transform_2(%arg0: i32) -> (i32, i32) {
    %c0_i32 = arith.constant 0 : i32
    %c0_i32_0 = arith.constant 0 : i32
    %c0_i32_1 = arith.constant 0 : i32
    return %c0_i32, %c0_i32_0 : i32, i32
  }
  func.func @transform_3(%arg0: i32) -> (i32, i32) {
    %c0_i32 = arith.constant 0 : i32
    %c0_i32_0 = arith.constant 0 : i32
    %c0_i32_1 = arith.constant 0 : i32
    return %c0_i32, %c0_i32_0 : i32, i32
  }
  func.func @transform_4(%arg0: i32) -> (i32, i32) {
    %c0_i32 = arith.constant 0 : i32
    %c0_i32_0 = arith.constant 0 : i32
    %c0_i32_1 = arith.constant 0 : i32
    return %c0_i32, %c0_i32_0 : i32, i32
  }
  func.func @transform_5(%arg0: i32) -> (i32, i32) {
    %c0_i32 = arith.constant 0 : i32
    %c0_i32_0 = arith.constant 0 : i32
    %c0_i32_1 = arith.constant 0 : i32
    return %c0_i32, %c0_i32_0 : i32, i32
  }
  func.func @transform_6(%arg0: i32) -> (i32, i32) {
    %c0_i32 = arith.constant 0 : i32
    %c0_i32_0 = arith.constant 0 : i32
    %c0_i32_1 = arith.constant 0 : i32
    return %c0_i32, %c0_i32_0 : i32, i32
  }
  func.func @transform_7(%arg0: i32) -> (i32, i32) {
    %c0_i32 = arith.constant 0 : i32
    %c0_i32_0 = arith.constant 0 : i32
    %c0_i32_1 = arith.constant 0 : i32
    return %c0_i32, %c0_i32_0 : i32, i32
  }
  func.func @transform_8(%arg0: i32) -> (i32, i32) {
    %c0_i32 = arith.constant 0 : i32
    %c0_i32_0 = arith.constant 0 : i32
    return %arg0, %c0_i32 : i32, i32
  }
}

module attributes {stable_mosaic.version = 11 : i64} {
  func.func @kernel(%arg0: i32, %arg1: memref<8x32xf32, #tpu.memory_space<vmem>>, %arg2: memref<2x32xf32, #tpu.memory_space<vmem>>, %arg3: memref<32x128xbf16, #tpu.memory_space<vmem>>, %arg4: memref<3x128xf32, #tpu.memory_space<vmem>>, %arg5: memref<128x128xbf16, #tpu.memory_space<vmem>>, %arg6: memref<3x128xf32, #tpu.memory_space<vmem>>, %arg7: memref<128x32xbf16, #tpu.memory_space<vmem>>, %arg8: memref<1x32xf32, #tpu.memory_space<vmem>>, %arg9: memref<8x32xf32, #tpu.memory_space<vmem>>) attributes {dimension_semantics = [#tpu.dimension_semantics<parallel>], iteration_bounds = array<i64: 1>, scalar_prefetch = 0 : i64, scratch_operands = 0 : i64, tpu.core_type = #tpu.core_type<tc>, window_params = [{transform_indices = @transform_0, window_bounds = array<i64: 8, 32>}, {pipeline_mode = #tpu.pipeline_mode<synchronous>, transform_indices = @transform_1, window_bounds = array<i64: 2, 32>}, {pipeline_mode = #tpu.pipeline_mode<synchronous>, transform_indices = @transform_2, window_bounds = array<i64: 32, 128>}, {pipeline_mode = #tpu.pipeline_mode<synchronous>, transform_indices = @transform_3, window_bounds = array<i64: 3, 128>}, {pipeline_mode = #tpu.pipeline_mode<synchronous>, transform_indices = @transform_4, window_bounds = array<i64: 128, 128>}, {pipeline_mode = #tpu.pipeline_mode<synchronous>, transform_indices = @transform_5, window_bounds = array<i64: 3, 128>}, {pipeline_mode = #tpu.pipeline_mode<synchronous>, transform_indices = @transform_6, window_bounds = array<i64: 128, 32>}, {pipeline_mode = #tpu.pipeline_mode<synchronous>, transform_indices = @transform_7, window_bounds = array<i64: 1, 32>}, {transform_indices = @transform_8, window_bounds = array<i64: 8, 32>}]} {
    %c0 = arith.constant 0 : index
    %c0_0 = arith.constant 0 : index
    %0 = vector.load %arg1[%c0, %c0_0] : memref<8x32xf32, #tpu.memory_space<vmem>>, vector<8x32xf32>
    %c0_1 = arith.constant 0 : index
    %c0_2 = arith.constant 0 : index
    %1 = vector.load %arg2[%c0_1, %c0_2] : memref<2x32xf32, #tpu.memory_space<vmem>>, vector<2x32xf32>
    %2 = vector.extract_strided_slice %1 {offsets = [0, 0], sizes = [1, 32], strides = [1, 1]} : vector<2x32xf32> to vector<1x32xf32>
    %3 = vector.extract_strided_slice %1 {offsets = [1, 0], sizes = [1, 32], strides = [1, 1]} : vector<2x32xf32> to vector<1x32xf32>
    %cst = arith.constant dense<0.000000e+00> : vector<8xf32>
    %4 = vector.multi_reduction <add>, %0, %cst [1] : vector<8x32xf32> to vector<8xf32>
    %5 = vector.shape_cast %4 : vector<8xf32> to vector<8x1xf32>
    %cst_3 = arith.constant 3.200000e+01 : f32
    %6 = vector.broadcast %cst_3 : f32 to vector<8x1xf32>
    %7 = arith.divf %5, %6 : vector<8x1xf32>
    %8 = vector.broadcast %7 : vector<8x1xf32> to vector<8x32xf32>
    %9 = arith.subf %0, %8 : vector<8x32xf32>
    %10 = arith.mulf %9, %9 : vector<8x32xf32>
    %cst_4 = arith.constant dense<0.000000e+00> : vector<8xf32>
    %11 = vector.multi_reduction <add>, %10, %cst_4 [1] : vector<8x32xf32> to vector<8xf32>
    %12 = vector.shape_cast %11 : vector<8xf32> to vector<8x1xf32>
    %cst_5 = arith.constant 3.200000e+01 : f32
    %13 = vector.broadcast %cst_5 : f32 to vector<8x1xf32>
    %14 = arith.divf %12, %13 : vector<8x1xf32>
    %cst_6 = arith.constant 9.99999974E-6 : f32
    %15 = vector.broadcast %cst_6 : f32 to vector<8x1xf32>
    %16 = arith.addf %14, %15 : vector<8x1xf32>
    %17 = math.rsqrt %16 : vector<8x1xf32>
    %18 = vector.broadcast %17 : vector<8x1xf32> to vector<8x32xf32>
    %19 = arith.mulf %9, %18 : vector<8x32xf32>
    %20 = vector.broadcast %2 : vector<1x32xf32> to vector<8x32xf32>
    %21 = arith.mulf %19, %20 : vector<8x32xf32>
    %22 = vector.broadcast %3 : vector<1x32xf32> to vector<8x32xf32>
    %23 = arith.addf %21, %22 : vector<8x32xf32>
    %c0_7 = arith.constant 0 : index
    %c0_8 = arith.constant 0 : index
    %24 = vector.load %arg3[%c0_7, %c0_8] : memref<32x128xbf16, #tpu.memory_space<vmem>>, vector<32x128xbf16>
    %c0_9 = arith.constant 0 : index
    %c0_10 = arith.constant 0 : index
    %25 = vector.load %arg4[%c0_9, %c0_10] : memref<3x128xf32, #tpu.memory_space<vmem>>, vector<3x128xf32>
    %26 = vector.extract_strided_slice %25 {offsets = [0, 0], sizes = [1, 128], strides = [1, 1]} : vector<3x128xf32> to vector<1x128xf32>
    %27 = vector.extract_strided_slice %25 {offsets = [1, 0], sizes = [1, 128], strides = [1, 1]} : vector<3x128xf32> to vector<1x128xf32>
    %28 = vector.extract_strided_slice %25 {offsets = [2, 0], sizes = [1, 128], strides = [1, 1]} : vector<3x128xf32> to vector<1x128xf32>
    %29 = arith.truncf %23 : vector<8x32xf32> to vector<8x32xbf16>
    %cst_11 = arith.constant dense<0.000000e+00> : vector<8x128xf32>
    %30 = tpu.matmul %29, %24, %cst_11 {dimension_numbers = #tpu.dot_dimension_numbers<[1], [0], [0], [1], [0, 0, 1, 1], [], []>} : vector<8x32xbf16>, vector<32x128xbf16>, vector<8x128xf32> -> vector<8x128xf32>
    %31 = vector.broadcast %26 : vector<1x128xf32> to vector<8x128xf32>
    %32 = arith.addf %30, %31 : vector<8x128xf32>
    %cst_12 = arith.constant dense<0.000000e+00> : vector<8xf32>
    %33 = vector.multi_reduction <add>, %32, %cst_12 [1] : vector<8x128xf32> to vector<8xf32>
    %34 = vector.shape_cast %33 : vector<8xf32> to vector<8x1xf32>
    %cst_13 = arith.constant 1.562500e-02 : f32
    %35 = vector.broadcast %cst_13 : f32 to vector<8x1xf32>
    %36 = arith.mulf %34, %35 : vector<8x1xf32>
    %37 = vector.broadcast %36 : vector<8x1xf32> to vector<8x128xf32>
    %38 = arith.subf %32, %37 : vector<8x128xf32>
    %39 = tpu.iota {dimensions = array<i32: 1>} : vector<8x128xi32>
    %c64_i32 = arith.constant 64 : i32
    %40 = vector.broadcast %c64_i32 : i32 to vector<8x128xi32>
    %41 = arith.cmpi slt, %39, %40 : vector<8x128xi32>
    %cst_14 = arith.constant 0.000000e+00 : f32
    %42 = vector.broadcast %cst_14 : f32 to vector<8x128xf32>
    %43 = arith.select %41, %38, %42 : vector<8x128xi1>, vector<8x128xf32>
    %44 = arith.mulf %43, %43 : vector<8x128xf32>
    %cst_15 = arith.constant dense<0.000000e+00> : vector<8xf32>
    %45 = vector.multi_reduction <add>, %44, %cst_15 [1] : vector<8x128xf32> to vector<8xf32>
    %46 = vector.shape_cast %45 : vector<8xf32> to vector<8x1xf32>
    %cst_16 = arith.constant 1.562500e-02 : f32
    %47 = vector.broadcast %cst_16 : f32 to vector<8x1xf32>
    %48 = arith.mulf %46, %47 : vector<8x1xf32>
    %cst_17 = arith.constant 9.99999974E-6 : f32
    %49 = vector.broadcast %cst_17 : f32 to vector<8x1xf32>
    %50 = arith.addf %48, %49 : vector<8x1xf32>
    %51 = math.rsqrt %50 : vector<8x1xf32>
    %52 = vector.broadcast %51 : vector<8x1xf32> to vector<8x128xf32>
    %53 = arith.mulf %43, %52 : vector<8x128xf32>
    %54 = vector.broadcast %27 : vector<1x128xf32> to vector<8x128xf32>
    %55 = arith.mulf %53, %54 : vector<8x128xf32>
    %56 = vector.broadcast %28 : vector<1x128xf32> to vector<8x128xf32>
    %57 = arith.addf %55, %56 : vector<8x128xf32>
    %cst_18 = arith.constant 0.000000e+00 : f32
    %58 = vector.broadcast %cst_18 : f32 to vector<8x128xf32>
    %59 = arith.maximumf %57, %58 : vector<8x128xf32>
    %c0_19 = arith.constant 0 : index
    %c0_20 = arith.constant 0 : index
    %60 = vector.load %arg5[%c0_19, %c0_20] : memref<128x128xbf16, #tpu.memory_space<vmem>>, vector<128x128xbf16>
    %c0_21 = arith.constant 0 : index
    %c0_22 = arith.constant 0 : index
    %61 = vector.load %arg6[%c0_21, %c0_22] : memref<3x128xf32, #tpu.memory_space<vmem>>, vector<3x128xf32>
    %62 = vector.extract_strided_slice %61 {offsets = [0, 0], sizes = [1, 128], strides = [1, 1]} : vector<3x128xf32> to vector<1x128xf32>
    %63 = vector.extract_strided_slice %61 {offsets = [1, 0], sizes = [1, 128], strides = [1, 1]} : vector<3x128xf32> to vector<1x128xf32>
    %64 = vector.extract_strided_slice %61 {offsets = [2, 0], sizes = [1, 128], strides = [1, 1]} : vector<3x128xf32> to vector<1x128xf32>
    %65 = arith.truncf %59 : vector<8x128xf32> to vector<8x128xbf16>
    %cst_23 = arith.constant dense<0.000000e+00> : vector<8x128xf32>
    %66 = tpu.matmul %65, %60, %cst_23 {dimension_numbers = #tpu.dot_dimension_numbers<[1], [0], [0], [1], [0, 0, 1, 1], [], []>} : vector<8x128xbf16>, vector<128x128xbf16>, vector<8x128xf32> -> vector<8x128xf32>
    %67 = vector.broadcast %62 : vector<1x128xf32> to vector<8x128xf32>
    %68 = arith.addf %66, %67 : vector<8x128xf32>
    %cst_24 = arith.constant dense<0.000000e+00> : vector<8xf32>
    %69 = vector.multi_reduction <add>, %68, %cst_24 [1] : vector<8x128xf32> to vector<8xf32>
    %70 = vector.shape_cast %69 : vector<8xf32> to vector<8x1xf32>
    %cst_25 = arith.constant 1.562500e-02 : f32
    %71 = vector.broadcast %cst_25 : f32 to vector<8x1xf32>
    %72 = arith.mulf %70, %71 : vector<8x1xf32>
    %73 = vector.broadcast %72 : vector<8x1xf32> to vector<8x128xf32>
    %74 = arith.subf %68, %73 : vector<8x128xf32>
    %75 = tpu.iota {dimensions = array<i32: 1>} : vector<8x128xi32>
    %c64_i32_26 = arith.constant 64 : i32
    %76 = vector.broadcast %c64_i32_26 : i32 to vector<8x128xi32>
    %77 = arith.cmpi slt, %75, %76 : vector<8x128xi32>
    %cst_27 = arith.constant 0.000000e+00 : f32
    %78 = vector.broadcast %cst_27 : f32 to vector<8x128xf32>
    %79 = arith.select %77, %74, %78 : vector<8x128xi1>, vector<8x128xf32>
    %80 = arith.mulf %79, %79 : vector<8x128xf32>
    %cst_28 = arith.constant dense<0.000000e+00> : vector<8xf32>
    %81 = vector.multi_reduction <add>, %80, %cst_28 [1] : vector<8x128xf32> to vector<8xf32>
    %82 = vector.shape_cast %81 : vector<8xf32> to vector<8x1xf32>
    %cst_29 = arith.constant 1.562500e-02 : f32
    %83 = vector.broadcast %cst_29 : f32 to vector<8x1xf32>
    %84 = arith.mulf %82, %83 : vector<8x1xf32>
    %cst_30 = arith.constant 9.99999974E-6 : f32
    %85 = vector.broadcast %cst_30 : f32 to vector<8x1xf32>
    %86 = arith.addf %84, %85 : vector<8x1xf32>
    %87 = math.rsqrt %86 : vector<8x1xf32>
    %88 = vector.broadcast %87 : vector<8x1xf32> to vector<8x128xf32>
    %89 = arith.mulf %79, %88 : vector<8x128xf32>
    %90 = vector.broadcast %63 : vector<1x128xf32> to vector<8x128xf32>
    %91 = arith.mulf %89, %90 : vector<8x128xf32>
    %92 = vector.broadcast %64 : vector<1x128xf32> to vector<8x128xf32>
    %93 = arith.addf %91, %92 : vector<8x128xf32>
    %cst_31 = arith.constant 0.000000e+00 : f32
    %94 = vector.broadcast %cst_31 : f32 to vector<8x128xf32>
    %95 = arith.maximumf %93, %94 : vector<8x128xf32>
    %c0_32 = arith.constant 0 : index
    %c0_33 = arith.constant 0 : index
    %96 = vector.load %arg7[%c0_32, %c0_33] : memref<128x32xbf16, #tpu.memory_space<vmem>>, vector<128x32xbf16>
    %c0_34 = arith.constant 0 : index
    %c0_35 = arith.constant 0 : index
    %97 = vector.load %arg8[%c0_34, %c0_35] : memref<1x32xf32, #tpu.memory_space<vmem>>, vector<1x32xf32>
    %98 = arith.truncf %95 : vector<8x128xf32> to vector<8x128xbf16>
    %cst_36 = arith.constant dense<0.000000e+00> : vector<8x32xf32>
    %99 = tpu.matmul %98, %96, %cst_36 {dimension_numbers = #tpu.dot_dimension_numbers<[1], [0], [0], [1], [0, 0, 1, 1], [], []>} : vector<8x128xbf16>, vector<128x32xbf16>, vector<8x32xf32> -> vector<8x32xf32>
    %100 = vector.broadcast %97 : vector<1x32xf32> to vector<8x32xf32>
    %101 = arith.addf %99, %100 : vector<8x32xf32>
    %c0_37 = arith.constant 0 : index
    %c0_38 = arith.constant 0 : index
    %102 = vector.load %arg9[%c0_37, %c0_38] : memref<8x32xf32, #tpu.memory_space<vmem>>, vector<8x32xf32>
    tpu.vector_store %arg9[%c0_37, %c0_38], %101 {strides = array<i32>} : memref<8x32xf32, #tpu.memory_space<vmem>>, vector<8x32xf32>,
    return
  }
  func.func @transform_0(%arg0: i32) -> (i32, i32) {
    %c0_i32 = arith.constant 0 : i32
    %c0_i32_0 = arith.constant 0 : i32
    return %arg0, %c0_i32 : i32, i32
  }
  func.func @transform_1(%arg0: i32) -> (i32, i32) {
    %c0_i32 = arith.constant 0 : i32
    %c0_i32_0 = arith.constant 0 : i32
    %c0_i32_1 = arith.constant 0 : i32
    return %c0_i32, %c0_i32_0 : i32, i32
  }
  func.func @transform_2(%arg0: i32) -> (i32, i32) {
    %c0_i32 = arith.constant 0 : i32
    %c0_i32_0 = arith.constant 0 : i32
    %c0_i32_1 = arith.constant 0 : i32
    return %c0_i32, %c0_i32_0 : i32, i32
  }
  func.func @transform_3(%arg0: i32) -> (i32, i32) {
    %c0_i32 = arith.constant 0 : i32
    %c0_i32_0 = arith.constant 0 : i32
    %c0_i32_1 = arith.constant 0 : i32
    return %c0_i32, %c0_i32_0 : i32, i32
  }
  func.func @transform_4(%arg0: i32) -> (i32, i32) {
    %c0_i32 = arith.constant 0 : i32
    %c0_i32_0 = arith.constant 0 : i32
    %c0_i32_1 = arith.constant 0 : i32
    return %c0_i32, %c0_i32_0 : i32, i32
  }
  func.func @transform_5(%arg0: i32) -> (i32, i32) {
    %c0_i32 = arith.constant 0 : i32
    %c0_i32_0 = arith.constant 0 : i32
    %c0_i32_1 = arith.constant 0 : i32
    return %c0_i32, %c0_i32_0 : i32, i32
  }
  func.func @transform_6(%arg0: i32) -> (i32, i32) {
    %c0_i32 = arith.constant 0 : i32
    %c0_i32_0 = arith.constant 0 : i32
    %c0_i32_1 = arith.constant 0 : i32
    return %c0_i32, %c0_i32_0 : i32, i32
  }
  func.func @transform_7(%arg0: i32) -> (i32, i32) {
    %c0_i32 = arith.constant 0 : i32
    %c0_i32_0 = arith.constant 0 : i32
    %c0_i32_1 = arith.constant 0 : i32
    return %c0_i32, %c0_i32_0 : i32, i32
  }
  func.func @transform_8(%arg0: i32) -> (i32, i32) {
    %c0_i32 = arith.constant 0 : i32
    %c0_i32_0 = arith.constant 0 : i32
    return %arg0, %c0_i32 : i32, i32
  }
}

</mosaic_0001>

<bundles_post_ra>
// kernel: tpu_custom_call.1
= control target key start
LH: loop header
LB: loop body
LE: loop exit
PB: predicated region body
PF: predicated region fallthrough
CT: control target
= control target key end

     0   :  { %13 = vsyncpa [#allocation3], 0  ;;  %s786_s0 = inlined_call_operand.hbm [shape: f32[8,32], index: 0, kind: input, shape index: {}]   ;;  %s787_s1 = inlined_call_operand.hbm [shape: f32[2,32], index: 1, kind: input, shape index: {}]   ;;  %s788_s2 = inlined_call_operand.vmem [shape: bf16[32,128], index: 2, kind: input, shape index: {}]   ;;  %s789_s3 = inlined_call_operand.vmem [shape: f32[3,128], index: 3, kind: input, shape index: {}]   ;;  %s790_s4 = inlined_call_operand.vmem [shape: bf16[128,128], index: 4, kind: input, shape index: {}]   ;;  %s791_s5 = inlined_call_operand.vmem [shape: f32[3,128], index: 5, kind: input, shape index: {}]   ;;  %s792_s6 = inlined_call_operand.vmem [shape: bf16[128,32], index: 6, kind: input, shape index: {}]   ;;  %s793_s7 = inlined_call_operand.vmem [shape: f32[1,32], index: 7, kind: input, shape index: {}]   ;;  %s794_s8 = inlined_call_operand.hbm [shape: f32[8,32], index: 8, kind: output, shape index: {}]  }
   0x1   :  { %14 = vsyncpa [#allocation6], 0 }
   0x2   :  { %15 = vsyncpa [#allocation4], 0  ;;  %s619_s27 = smov [#allocation2]   ;;  %s620_s29 = smov [#allocation5]  }
   0x3   :  { %s22_s28 = sshll.u32 %s619_s27, 4  ;;  %s32_s30 = sshll.u32 %s620_s29, 4  ;;  %s23_s28 = int_to_ptr.vmem [resolvable:$true] %s22_s28  ;;  %s33_s30 = int_to_ptr.vmem [resolvable:$true] %s32_s30 }
   0x4   :  { %s561_s9 = scalar_lea.vmem %s23_s28, 128  ;;  %p566_p1 = scmp.lt.s32.totalorder %s23_s28, %s23_s28 }
   0x5   :  { %p562_p0 = scmp.ne.s32.totalorder %s23_s28, %s561_s9  ;;  %p567_p2 = scmp.lt.s32.totalorder %s561_s9, %s561_s9 }
   0x7   :  { %p568_p3 = por %p567_p2, %p566_p1 }
   0x9   :  { %p569_p4 = pnand %p568_p3, %p562_p0 }
   0xb   :  { %572 = shalt.err (!%p569_p4)
}
   0xc   :  { %25 = dma.hbm_to_vmem [thread:$0]  %s786_s0, 128, %s23_s28, [#allocation3]  }
   0xd   :  { %s581_s12 = scalar_lea.vmem %s33_s30, 32  ;;  %p586_p6 = scmp.lt.s32.totalorder %s33_s30, %s33_s30 }
   0xe   :  { %p582_p5 = scmp.ne.s32.totalorder %s33_s30, %s581_s12  ;;  %p587_p7 = scmp.lt.s32.totalorder %s581_s12, %s581_s12 }
  0x10   :  { %p588_p8 = por %p587_p7, %p586_p6 }
  0x12   :  { %p589_p9 = pnand %p588_p8, %p582_p5 }
  0x14   :  { %592 = shalt.err (!%p589_p9)
}
  0x15   :  { %35 = dma.hbm_to_vmem [thread:$0]  %s787_s1, 32, %s33_s30, [#allocation6]  }
  0x16   :  { %613 = dma.done.wait [#allocation3], 128  }
  0x17   :  { %614 = vsyncadd [#allocation3], 4294967168 }
  0x18   :  { %615 = dma.done.wait [#allocation6], 32  }
  0x19   :  { %616 = vsyncadd [#allocation6], 4294967264  ;;  %vm57_vm0 = vcmask 261120   ;;  %v55_v0 = vld [vmem:[#allocation2] sm:$0xff]  ;;  %v529_v7 = vld [vmem:[%s788_s2 + $0x8] sm:$0xff]   ;;  %v621_v8 = vmov 0.0   ;;  %v72_v13 = vlaneseq }
  0x1a   :  { %v58_v1 = vsel %vm57_vm0, %v55_v0, 0.0  ;;  %476 = vmatprep.subr.bf16.mxu0 %v621_v8  ;;  %vm622_vm1 = vmmov 0   ;;  %v530_v9 = vld [vmem:[%s788_s2] sm:$0xff]   ;;  %484 = vmatprep.subr.bf16.mxu1 %v621_v8  ;;  %v56_v16 = vld [vmem:[#allocation5] sm:$0x3]  ;;  %v531_v32 = vld [vmem:[%s790_s4 + $0x38] sm:$0xff]  }
  0x1b   :  { %59 = vadd.xlane.f32.xlu0 %v58_v1  ;;  %480 = vmatprep.mubr.msk.bf16.mxu0 %vm622_vm1, %v621_v8  ;;  %v691_v14 = vshrl.u32 %v72_v13, 7  ;;  %v86_v25 = vld [vmem:[%s789_s3] sm:$0x7]  ;;  %v152_v33 = vand.u32 127, %v72_v13  ;;  %v532_v39 = vld [vmem:[%s790_s4 + $0x30] sm:$0xff]   ;;  %v533_v40 = vld [vmem:[%s790_s4 + $0x28] sm:$0xff]  }
  0x1c   :  { %477 = vmatpush3.bf16.msra.mxu0 %v529_v7  ;;  %500 = vmatprep.mubr.msk.bf16.mxu1 %vm622_vm1, %v621_v8  ;;  %v534_v41 = vld [vmem:[%s790_s4 + $0x20] sm:$0xff]   ;;  %v535_v42 = vld [vmem:[%s790_s4 + $0x18] sm:$0xff]   ;;  %v536_v43 = vld [vmem:[%s790_s4 + $0x10] sm:$0xff]  }
  0x1d   :  { %478 = vmatprep.subr.bf16.mxu0 %v621_v8  ;;  %v694_v15 = vsub.s32 0, %v691_v14  ;;  %v697_v17 = vsub.s32 1, %v691_v14  ;;  %485 = vmatpush3.bf16.msra.mxu1 %v531_v32  ;;  %vm153_vm2 = vcmp.lt.s32.totalorder %v152_v33, 64  ;;  %v537_v44 = vld [vmem:[%s790_s4 + $0x8] sm:$0xff]   ;;  %v538_v45 = vld [vmem:[%s790_s4] sm:$0xff]   ;;  %v169_v49 = vsub.s32 2, %v691_v14 }
  0x1e   :  { %486 = vmatprep.subr.bf16.mxu1 %v621_v8  ;;  %v189_v58 = vld [vmem:[%s791_s5] sm:$0x7]  ;;  %v539_v1 = vld [vmem:[%s792_s6 + $0x38] sm:$0xff]   ;;  %v540_v7 = vld [vmem:[%s792_s6 + $0x30] sm:$0xff]  }
  0x1f   :  { %v75_v18 = vrot.slane %v56_v16, %v694_v15  ;;  %v80_v21 = vrot.slane %v56_v16, %v697_v17  ;;  %v91_v26 = vrot.slane %v86_v25, %v694_v15  ;;  %v165_v50 = vrot.slane %v86_v25, %v697_v17  ;;  %v545_v13 = vld [vmem:[%s792_s6 + $0x8] sm:$0xff]   ;;  %v546_v14 = vld [vmem:[%s792_s6] sm:$0xff]  }
  0x20   :  { %479 = vmatpush3.bf16.msra.mxu0 %v530_v9  ;;  %v170_v53 = vrot.slane %v86_v25, %v169_v49  ;;  %v194_v59 = vrot.slane %v189_v58, %v694_v15  ;;  %v541_v9 = vld [vmem:[%s792_s6 + $0x28] sm:$0xff]  }
  0x21   :  { %504 = vmatprep.subr.bf16.mxu0 %v621_v8  ;;  %487 = vmatpush3.bf16.msra.mxu1 %v532_v39 }
  0x22   :  { %488 = vmatprep.subr.bf16.mxu1 %v621_v8 }
  0x25   :  { %489 = vmatpush3.bf16.msra.mxu1 %v533_v40 }
  0x26   :  { %490 = vmatprep.subr.bf16.mxu1 %v621_v8 }
  0x29   :  { %491 = vmatpush3.bf16.msra.mxu1 %v534_v41 }
  0x2a   :  { %492 = vmatprep.subr.bf16.mxu1 %v621_v8 }
  0x2d   :  { %493 = vmatpush3.bf16.msra.mxu1 %v535_v42 }
  0x2e   :  { %494 = vmatprep.subr.bf16.mxu1 %v621_v8 }
  0x31   :  { %495 = vmatpush3.bf16.msra.mxu1 %v536_v43 }
  0x32   :  { %496 = vmatprep.subr.bf16.mxu1 %v621_v8 }
  0x35   :  { %497 = vmatpush3.bf16.msra.mxu1 %v537_v44 }
  0x36   :  { %498 = vmatprep.subr.bf16.mxu1 %v621_v8 }
  0x39   :  { %499 = vmatpush3.bf16.msra.mxu1 %v538_v45 }
  0xa4   :  { %v60_v2 = vpop.xlane.xlu0 %59 }
  0xa5   :  { %v62_v3 = vmul.f32 0.03125, %v60_v2 }
  0xa7   :  { %v63_v4 = vsub.f32 %v55_v0, %v62_v3 }
  0xa9   :  { %v64_v5 = vmul.f32 %v63_v4, %v63_v4 }
  0xab   :  { %v65_v6 = vsel %vm57_vm0, %v64_v5, 0.0 }
  0xac   :  { %66 = vadd.xlane.f32.xlu0 %v65_v6 }
 0x135   :  { %v67_v10 = vpop.xlane.xlu0 %66 }
 0x136   :  { %v68_v11 = vmul.f32 0.03125, %v67_v10  ;;  %v542_v10 = vld [vmem:[%s792_s6 + $0x20] sm:$0xff]  }
 0x138   :  { %v69_v12 = vadd.f32 1e-05, %v68_v11  ;;  %v543_v11 = vld [vmem:[%s792_s6 + $0x18] sm:$0xff]  }
 0x13a   :  { %547 = vrsqrt.f32 %v69_v12  ;;  %v544_v12 = vld [vmem:[%s792_s6 + $0x10] sm:$0xff]   ;;  %s623_s6 = smov [#allocation7]  }
 0x13b   :  { %s425_s25 = sshll.u32 %s623_s6, 4  ;;  %s426_s25 = int_to_ptr.vmem [resolvable:$true] %s425_s25 }
 0x13c   :  { %s593_s26 = scalar_lea.vmem %s426_s25, 128  ;;  %p598_p11 = scmp.lt.s32.totalorder %s426_s25, %s426_s25 }
 0x13d   :  { %p594_p10 = scmp.ne.s32.totalorder %s426_s25, %s593_s26  ;;  %p599_p12 = scmp.lt.s32.totalorder %s593_s26, %s593_s26 }
 0x13f   :  { %p600_p13 = por %p599_p12, %p598_p11 }
 0x141   :  { %p601_p0 = pnand %p600_p13, %p594_p10 }
 0x147   :  { %v548_v19 = vpop.eup %547 }
 0x148   :  { %v71_v20 = vmul.f32 %v548_v19, %v63_v4  ;;  %v298_v19 = vrot.slane %v189_v58, %v697_v17 }
 0x14a   :  { %v76_v22 = vmul.f32 %v75_v18, %v71_v20 }
 0x14c   :  { %v81_v23 = vadd.f32 %v80_v21, %v76_v22  ;;  %v303_v21 = vrot.slane %v189_v58, %v169_v49 }
 0x14e   :  { %v87_v24 = vpack.c.bf16 %v81_v23, %v81_v23 }
 0x150   :  { %481 = vmatmul.mubr.msk.bf16.vlgmr.msra.gmra.mxu0 %vm57_vm0, %v87_v24 }
 0x151   :  { %520 = vmatprep.mubr.msk.bf16.mxu0 %vm622_vm1, %v621_v8  ;;  %505 = vmatpush3.bf16.msra.mxu0 %v539_v1 }
 0x152   :  { %506 = vmatprep.subr.bf16.mxu0 %v621_v8 }
 0x155   :  { %507 = vmatpush3.bf16.msra.mxu0 %v540_v7 }
 0x156   :  { %508 = vmatprep.subr.bf16.mxu0 %v621_v8 }
 0x159   :  { %509 = vmatpush3.bf16.msra.mxu0 %v541_v9 }
 0x15a   :  { %510 = vmatprep.subr.bf16.mxu0 %v621_v8 }
 0x15d   :  { %511 = vmatpush3.bf16.msra.mxu0 %v542_v10 }
 0x15e   :  { %512 = vmatprep.subr.bf16.mxu0 %v621_v8 }
 0x161   :  { %513 = vmatpush3.bf16.msra.mxu0 %v543_v11 }
 0x162   :  { %514 = vmatprep.subr.bf16.mxu0 %v621_v8 }
 0x165   :  { %515 = vmatpush3.bf16.msra.mxu0 %v544_v12 }
 0x166   :  { %516 = vmatprep.subr.bf16.mxu0 %v621_v8 }
 0x169   :  { %517 = vmatpush3.bf16.msra.mxu0 %v545_v13 }
 0x16a   :  { %518 = vmatprep.subr.bf16.mxu0 %v621_v8 }
 0x16d   :  { %519 = vmatpush3.bf16.msra.mxu0 %v546_v14 }
 0x210   :  { %v141_v27 = vpop.f32.mrf.mxu0 }
 0x211   :  { %v142_v28 = vadd.f32 %v141_v27, %v91_v26  ;;  %v446_v27 = vld [vmem:[%s793_s7] ss:$0 sm:$0xff] }
 0x212   :  { %v482_v29 = vpop.f32.mrf.mxu0 }
 0x213   :  { %147 = vadd.xlane.f32.xlu1 %v142_v28 }
 0x214   :  { %v144_v30 = vpop.f32.mrf.mxu0 }
 0x216   :  { %v483_v31 = vpop.f32.mrf.mxu0 }
 0x29c   :  { %v148_v34 = vpop.xlane.xlu1 %147 }
 0x29d   :  { %v149_v35 = vmul.f32 0.015625, %v148_v34 }
 0x29f   :  { %v150_v36 = vsub.f32 %v142_v28, %v149_v35 }
 0x2a1   :  { %v154_v37 = vsel %vm153_vm2, %v150_v36, 0.0 }
 0x2a2   :  { %v155_v38 = vmul.f32 %v154_v37, %v154_v37 }
 0x2a4   :  { %156 = vadd.xlane.f32.xlu1 %v155_v38 }
 0x32d   :  { %v157_v46 = vpop.xlane.xlu1 %156 }
 0x32e   :  { %v158_v47 = vmul.f32 0.015625, %v157_v46 }
 0x330   :  { %v159_v48 = vadd.f32 1e-05, %v158_v47 }
 0x332   :  { %549 = vrsqrt.f32 %v159_v48 }
 0x33f   :  { %v550_v51 = vpop.eup %549 }
 0x340   :  { %v161_v52 = vmul.f32 %v550_v51, %v154_v37 }
 0x342   :  { %v166_v54 = vmul.f32 %v165_v50, %v161_v52 }
 0x344   :  { %v171_v55 = vadd.f32 %v170_v53, %v166_v54 }
 0x346   :  { %v172_v56 = vmax.f32 %v171_v55, 0.0 }
 0x348   :  { %v190_v57 = vpack.c.bf16 %v172_v56, %v172_v56 }
 0x34a   :  { %501 = vmatmul.mubr.bf16.vlgmr.msra.gmra.mxu1 %v190_v57 }
 0x40a   :  { %v277_v60 = vpop.f32.mrf.mxu1 }
 0x40b   :  { %v278_v61 = vadd.f32 %v277_v60, %v194_v59 }
 0x40c   :  { %v502_v62 = vpop.f32.mrf.mxu1 }
 0x40d   :  { %283 = vadd.xlane.f32.xlu0 %v278_v61 }
 0x40e   :  { %v280_v63 = vpop.f32.mrf.mxu1 }
 0x410   :  { %v503_v0 = vpop.f32.mrf.mxu1 }
 0x496   :  { %v284_v2 = vpop.xlane.xlu0 %283 }
 0x497   :  { %v285_v3 = vmul.f32 0.015625, %v284_v2 }
 0x499   :  { %v286_v4 = vsub.f32 %v278_v61, %v285_v3 }
 0x49b   :  { %v287_v5 = vsel %vm153_vm2, %v286_v4, 0.0 }
 0x49c   :  { %v288_v6 = vmul.f32 %v287_v5, %v287_v5 }
 0x49e   :  { %289 = vadd.xlane.f32.xlu1 %v288_v6 }
 0x527   :  { %v290_v15 = vpop.xlane.xlu1 %289 }
 0x528   :  { %v291_v16 = vmul.f32 0.015625, %v290_v15 }
 0x52a   :  { %v292_v18 = vadd.f32 1e-05, %v291_v16 }
 0x52c   :  { %551 = vrsqrt.f32 %v292_v18 }
 0x539   :  { %v552_v20 = vpop.eup %551 }
 0x53a   :  { %v294_v22 = vmul.f32 %v552_v20, %v287_v5 }
 0x53c   :  { %v299_v23 = vmul.f32 %v298_v19, %v294_v22 }
 0x53e   :  { %v304_v24 = vadd.f32 %v303_v21, %v299_v23 }
 0x540   :  { %v305_v25 = vmax.f32 %v304_v24, 0.0 }
 0x542   :  { %v323_v26 = vpack.c.bf16 %v305_v25, %v305_v25 }
 0x544   :  { %521 = vmatmul.mubr.bf16.vlgmr.msra.gmra.mxu0 %v323_v26 }
 0x604   :  { %v412_v8 = vpop.f32.mrf.mxu0 }
 0x605   :  { %v413_v28 = vadd.f32 %v446_v27, %v412_v8 }
 0x606   :  { %v522_v29 = vpop.f32.mrf.mxu0 }
 0x607   :  { %418 = vst.msk [vmem:[#allocation7] sm:$0xff] %vm57_vm0, %v413_v28 }
 0x608   :  { %v415_v17 = vpop.f32.mrf.mxu0 }
 0x609   :  { %604 = shalt.err (!%p601_p0)
}
 0x60a   :  { %428 = dma.vmem_to_hbm [thread:$0]  %s426_s25, 128, %s794_s8, [#allocation4]   ;;  %v523_v30 = vpop.f32.mrf.mxu0 }
 0x60b   :  { %617 = dma.done.wait [#allocation4], 128  }
 0x60c   :  { %618 = vsyncadd [#allocation4], 4294967168 }
 0x60d   :  { %432 = vsyncpa [#allocation3], 1 }
 0x60e   :  { %433 = vsyncpa [#allocation6], 1 }
 0x60f   :  { %434 = vsyncpa [#allocation4], 1 }

// kernel: tpu_custom_call.1
= control target key start
LH: loop header
LB: loop body
LE: loop exit
PB: predicated region body
PF: predicated region fallthrough
CT: control target
= control target key end

     0   :  { %13 = vsyncpa [#allocation3], 0  ;;  %s786_s0 = inlined_call_operand.hbm [shape: f32[8,32], index: 0, kind: input, shape index: {}]   ;;  %s787_s1 = inlined_call_operand.hbm [shape: f32[2,32], index: 1, kind: input, shape index: {}]   ;;  %s788_s2 = inlined_call_operand.vmem [shape: bf16[32,128], index: 2, kind: input, shape index: {}]   ;;  %s789_s3 = inlined_call_operand.vmem [shape: f32[3,128], index: 3, kind: input, shape index: {}]   ;;  %s790_s4 = inlined_call_operand.vmem [shape: bf16[128,128], index: 4, kind: input, shape index: {}]   ;;  %s791_s5 = inlined_call_operand.vmem [shape: f32[3,128], index: 5, kind: input, shape index: {}]   ;;  %s792_s6 = inlined_call_operand.vmem [shape: bf16[128,32], index: 6, kind: input, shape index: {}]   ;;  %s793_s7 = inlined_call_operand.vmem [shape: f32[1,32], index: 7, kind: input, shape index: {}]   ;;  %s794_s8 = inlined_call_operand.hbm [shape: f32[8,32], index: 8, kind: output, shape index: {}]  }
   0x1   :  { %14 = vsyncpa [#allocation6], 0 }
   0x2   :  { %15 = vsyncpa [#allocation4], 0  ;;  %s619_s27 = smov [#allocation2]   ;;  %s620_s29 = smov [#allocation5]  }
   0x3   :  { %s22_s28 = sshll.u32 %s619_s27, 4  ;;  %s32_s30 = sshll.u32 %s620_s29, 4  ;;  %s23_s28 = int_to_ptr.vmem [resolvable:$true] %s22_s28  ;;  %s33_s30 = int_to_ptr.vmem [resolvable:$true] %s32_s30 }
   0x4   :  { %s561_s9 = scalar_lea.vmem %s23_s28, 128  ;;  %p566_p1 = scmp.lt.s32.totalorder %s23_s28, %s23_s28 }
   0x5   :  { %p562_p0 = scmp.ne.s32.totalorder %s23_s28, %s561_s9  ;;  %p567_p2 = scmp.lt.s32.totalorder %s561_s9, %s561_s9 }
   0x7   :  { %p568_p3 = por %p567_p2, %p566_p1 }
   0x9   :  { %p569_p4 = pnand %p568_p3, %p562_p0 }
   0xb   :  { %572 = shalt.err (!%p569_p4)
}
   0xc   :  { %25 = dma.hbm_to_vmem [thread:$0]  %s786_s0, 128, %s23_s28, [#allocation3]  }
   0xd   :  { %s581_s12 = scalar_lea.vmem %s33_s30, 32  ;;  %p586_p6 = scmp.lt.s32.totalorder %s33_s30, %s33_s30 }
   0xe   :  { %p582_p5 = scmp.ne.s32.totalorder %s33_s30, %s581_s12  ;;  %p587_p7 = scmp.lt.s32.totalorder %s581_s12, %s581_s12 }
  0x10   :  { %p588_p8 = por %p587_p7, %p586_p6 }
  0x12   :  { %p589_p9 = pnand %p588_p8, %p582_p5 }
  0x14   :  { %592 = shalt.err (!%p589_p9)
}
  0x15   :  { %35 = dma.hbm_to_vmem [thread:$0]  %s787_s1, 32, %s33_s30, [#allocation6]  }
  0x16   :  { %613 = dma.done.wait [#allocation3], 128  }
  0x17   :  { %614 = vsyncadd [#allocation3], 4294967168 }
  0x18   :  { %615 = dma.done.wait [#allocation6], 32  }
  0x19   :  { %616 = vsyncadd [#allocation6], 4294967264  ;;  %vm57_vm0 = vcmask 261120   ;;  %v55_v0 = vld [vmem:[#allocation2] sm:$0xff]  ;;  %v529_v7 = vld [vmem:[%s788_s2 + $0x8] sm:$0xff]   ;;  %v621_v8 = vmov 0.0   ;;  %v72_v13 = vlaneseq }
  0x1a   :  { %v58_v1 = vsel %vm57_vm0, %v55_v0, 0.0  ;;  %476 = vmatprep.subr.bf16.mxu0 %v621_v8  ;;  %vm622_vm1 = vmmov 0   ;;  %v530_v9 = vld [vmem:[%s788_s2] sm:$0xff]   ;;  %484 = vmatprep.subr.bf16.mxu1 %v621_v8  ;;  %v56_v16 = vld [vmem:[#allocation5] sm:$0x3]  ;;  %v531_v32 = vld [vmem:[%s790_s4 + $0x38] sm:$0xff]  }
  0x1b   :  { %59 = vadd.xlane.f32.xlu0 %v58_v1  ;;  %480 = vmatprep.mubr.msk.bf16.mxu0 %vm622_vm1, %v621_v8  ;;  %v691_v14 = vshrl.u32 %v72_v13, 7  ;;  %v86_v25 = vld [vmem:[%s789_s3] sm:$0x7]  ;;  %v152_v33 = vand.u32 127, %v72_v13  ;;  %v532_v39 = vld [vmem:[%s790_s4 + $0x30] sm:$0xff]   ;;  %v533_v40 = vld [vmem:[%s790_s4 + $0x28] sm:$0xff]  }
  0x1c   :  { %477 = vmatpush3.bf16.msra.mxu0 %v529_v7  ;;  %500 = vmatprep.mubr.msk.bf16.mxu1 %vm622_vm1, %v621_v8  ;;  %v534_v41 = vld [vmem:[%s790_s4 + $0x20] sm:$0xff]   ;;  %v535_v42 = vld [vmem:[%s790_s4 + $0x18] sm:$0xff]   ;;  %v536_v43 = vld [vmem:[%s790_s4 + $0x10] sm:$0xff]  }
  0x1d   :  { %478 = vmatprep.subr.bf16.mxu0 %v621_v8  ;;  %v694_v15 = vsub.s32 0, %v691_v14  ;;  %v697_v17 = vsub.s32 1, %v691_v14  ;;  %485 = vmatpush3.bf16.msra.mxu1 %v531_v32  ;;  %vm153_vm2 = vcmp.lt.s32.totalorder %v152_v33, 64  ;;  %v537_v44 = vld [vmem:[%s790_s4 + $0x8] sm:$0xff]   ;;  %v538_v45 = vld [vmem:[%s790_s4] sm:$0xff]   ;;  %v169_v49 = vsub.s32 2, %v691_v14 }
  0x1e   :  { %486 = vmatprep.subr.bf16.mxu1 %v621_v8  ;;  %v189_v58 = vld [vmem:[%s791_s5] sm:$0x7]  ;;  %v539_v1 = vld [vmem:[%s792_s6 + $0x38] sm:$0xff]   ;;  %v540_v7 = vld [vmem:[%s792_s6 + $0x30] sm:$0xff]  }
  0x1f   :  { %v75_v18 = vrot.slane %v56_v16, %v694_v15  ;;  %v80_v21 = vrot.slane %v56_v16, %v697_v17  ;;  %v91_v26 = vrot.slane %v86_v25, %v694_v15  ;;  %v165_v50 = vrot.slane %v86_v25, %v697_v17  ;;  %v545_v13 = vld [vmem:[%s792_s6 + $0x8] sm:$0xff]   ;;  %v546_v14 = vld [vmem:[%s792_s6] sm:$0xff]  }
  0x20   :  { %479 = vmatpush3.bf16.msra.mxu0 %v530_v9  ;;  %v170_v53 = vrot.slane %v86_v25, %v169_v49  ;;  %v194_v59 = vrot.slane %v189_v58, %v694_v15  ;;  %v541_v9 = vld [vmem:[%s792_s6 + $0x28] sm:$0xff]  }
  0x21   :  { %504 = vmatprep.subr.bf16.mxu0 %v621_v8  ;;  %487 = vmatpush3.bf16.msra.mxu1 %v532_v39 }
  0x22   :  { %488 = vmatprep.subr.bf16.mxu1 %v621_v8 }
  0x25   :  { %489 = vmatpush3.bf16.msra.mxu1 %v533_v40 }
  0x26   :  { %490 = vmatprep.subr.bf16.mxu1 %v621_v8 }
  0x29   :  { %491 = vmatpush3.bf16.msra.mxu1 %v534_v41 }
  0x2a   :  { %492 = vmatprep.subr.bf16.mxu1 %v621_v8 }
  0x2d   :  { %493 = vmatpush3.bf16.msra.mxu1 %v535_v42 }
  0x2e   :  { %494 = vmatprep.subr.bf16.mxu1 %v621_v8 }
  0x31   :  { %495 = vmatpush3.bf16.msra.mxu1 %v536_v43 }
  0x32   :  { %496 = vmatprep.subr.bf16.mxu1 %v621_v8 }
  0x35   :  { %497 = vmatpush3.bf16.msra.mxu1 %v537_v44 }
  0x36   :  { %498 = vmatprep.subr.bf16.mxu1 %v621_v8 }
  0x39   :  { %499 = vmatpush3.bf16.msra.mxu1 %v538_v45 }
  0xa4   :  { %v60_v2 = vpop.xlane.xlu0 %59 }
  0xa5   :  { %v62_v3 = vmul.f32 0.03125, %v60_v2 }
  0xa7   :  { %v63_v4 = vsub.f32 %v55_v0, %v62_v3 }
  0xa9   :  { %v64_v5 = vmul.f32 %v63_v4, %v63_v4 }
  0xab   :  { %v65_v6 = vsel %vm57_vm0, %v64_v5, 0.0 }
  0xac   :  { %66 = vadd.xlane.f32.xlu0 %v65_v6 }
 0x135   :  { %v67_v10 = vpop.xlane.xlu0 %66 }
 0x136   :  { %v68_v11 = vmul.f32 0.03125, %v67_v10  ;;  %v542_v10 = vld [vmem:[%s792_s6 + $0x20] sm:$0xff]  }
 0x138   :  { %v69_v12 = vadd.f32 1e-05, %v68_v11  ;;  %v543_v11 = vld [vmem:[%s792_s6 + $0x18] sm:$0xff]  }
 0x13a   :  { %547 = vrsqrt.f32 %v69_v12  ;;  %v544_v12 = vld [vmem:[%s792_s6 + $0x10] sm:$0xff]   ;;  %s623_s6 = smov [#allocation7]  }
 0x13b   :  { %s425_s25 = sshll.u32 %s623_s6, 4  ;;  %s426_s25 = int_to_ptr.vmem [resolvable:$true] %s425_s25 }
 0x13c   :  { %s593_s26 = scalar_lea.vmem %s426_s25, 128  ;;  %p598_p11 = scmp.lt.s32.totalorder %s426_s25, %s426_s25 }
 0x13d   :  { %p594_p10 = scmp.ne.s32.totalorder %s426_s25, %s593_s26  ;;  %p599_p12 = scmp.lt.s32.totalorder %s593_s26, %s593_s26 }
 0x13f   :  { %p600_p13 = por %p599_p12, %p598_p11 }
 0x141   :  { %p601_p0 = pnand %p600_p13, %p594_p10 }
 0x147   :  { %v548_v19 = vpop.eup %547 }
 0x148   :  { %v71_v20 = vmul.f32 %v548_v19, %v63_v4  ;;  %v298_v19 = vrot.slane %v189_v58, %v697_v17 }
 0x14a   :  { %v76_v22 = vmul.f32 %v75_v18, %v71_v20 }
 0x14c   :  { %v81_v23 = vadd.f32 %v80_v21, %v76_v22  ;;  %v303_v21 = vrot.slane %v189_v58, %v169_v49 }
 0x14e   :  { %v87_v24 = vpack.c.bf16 %v81_v23, %v81_v23 }
 0x150   :  { %481 = vmatmul.mubr.msk.bf16.vlgmr.msra.gmra.mxu0 %vm57_vm0, %v87_v24 }
 0x151   :  { %520 = vmatprep.mubr.msk.bf16.mxu0 %vm622_vm1, %v621_v8  ;;  %505 = vmatpush3.bf16.msra.mxu0 %v539_v1 }
 0x152   :  { %506 = vmatprep.subr.bf16.mxu0 %v621_v8 }
 0x155   :  { %507 = vmatpush3.bf16.msra.mxu0 %v540_v7 }
 0x156   :  { %508 = vmatprep.subr.bf16.mxu0 %v621_v8 }
 0x159   :  { %509 = vmatpush3.bf16.msra.mxu0 %v541_v9 }
 0x15a   :  { %510 = vmatprep.subr.bf16.mxu0 %v621_v8 }
 0x15d   :  { %511 = vmatpush3.bf16.msra.mxu0 %v542_v10 }
 0x15e   :  { %512 = vmatprep.subr.bf16.mxu0 %v621_v8 }
 0x161   :  { %513 = vmatpush3.bf16.msra.mxu0 %v543_v11 }
 0x162   :  { %514 = vmatprep.subr.bf16.mxu0 %v621_v8 }
 0x165   :  { %515 = vmatpush3.bf16.msra.mxu0 %v544_v12 }
 0x166   :  { %516 = vmatprep.subr.bf16.mxu0 %v621_v8 }
 0x169   :  { %517 = vmatpush3.bf16.msra.mxu0 %v545_v13 }
 0x16a   :  { %518 = vmatprep.subr.bf16.mxu0 %v621_v8 }
 0x16d   :  { %519 = vmatpush3.bf16.msra.mxu0 %v546_v14 }
 0x210   :  { %v141_v27 = vpop.f32.mrf.mxu0 }
 0x211   :  { %v142_v28 = vadd.f32 %v141_v27, %v91_v26  ;;  %v446_v27 = vld [vmem:[%s793_s7] ss:$0 sm:$0xff] }
 0x212   :  { %v482_v29 = vpop.f32.mrf.mxu0 }
 0x213   :  { %147 = vadd.xlane.f32.xlu1 %v142_v28 }
 0x214   :  { %v144_v30 = vpop.f32.mrf.mxu0 }
 0x216   :  { %v483_v31 = vpop.f32.mrf.mxu0 }
 0x29c   :  { %v148_v34 = vpop.xlane.xlu1 %147 }
 0x29d   :  { %v149_v35 = vmul.f32 0.015625, %v148_v34 }
 0x29f   :  { %v150_v36 = vsub.f32 %v142_v28, %v149_v35 }
 0x2a1   :  { %v154_v37 = vsel %vm153_vm2, %v150_v36, 0.0 }
 0x2a2   :  { %v155_v38 = vmul.f32 %v154_v37, %v154_v37 }
 0x2a4   :  { %156 = vadd.xlane.f32.xlu1 %v155_v38 }
 0x32d   :  { %v157_v46 = vpop.xlane.xlu1 %156 }
 0x32e   :  { %v158_v47 = vmul.f32 0.015625, %v157_v46 }
 0x330   :  { %v159_v48 = vadd.f32 1e-05, %v158_v47 }
 0x332   :  { %549 = vrsqrt.f32 %v159_v48 }
 0x33f   :  { %v550_v51 = vpop.eup %549 }
 0x340   :  { %v161_v52 = vmul.f32 %v550_v51, %v154_v37 }
 0x342   :  { %v166_v54 = vmul.f32 %v165_v50, %v161_v52 }
 0x344   :  { %v171_v55 = vadd.f32 %v170_v53, %v166_v54 }
 0x346   :  { %v172_v56 = vmax.f32 %v171_v55, 0.0 }
 0x348   :  { %v190_v57 = vpack.c.bf16 %v172_v56, %v172_v56 }
 0x34a   :  { %501 = vmatmul.mubr.bf16.vlgmr.msra.gmra.mxu1 %v190_v57 }
 0x40a   :  { %v277_v60 = vpop.f32.mrf.mxu1 }
 0x40b   :  { %v278_v61 = vadd.f32 %v277_v60, %v194_v59 }
 0x40c   :  { %v502_v62 = vpop.f32.mrf.mxu1 }
 0x40d   :  { %283 = vadd.xlane.f32.xlu0 %v278_v61 }
 0x40e   :  { %v280_v63 = vpop.f32.mrf.mxu1 }
 0x410   :  { %v503_v0 = vpop.f32.mrf.mxu1 }
 0x496   :  { %v284_v2 = vpop.xlane.xlu0 %283 }
 0x497   :  { %v285_v3 = vmul.f32 0.015625, %v284_v2 }
 0x499   :  { %v286_v4 = vsub.f32 %v278_v61, %v285_v3 }
 0x49b   :  { %v287_v5 = vsel %vm153_vm2, %v286_v4, 0.0 }
 0x49c   :  { %v288_v6 = vmul.f32 %v287_v5, %v287_v5 }
 0x49e   :  { %289 = vadd.xlane.f32.xlu1 %v288_v6 }
 0x527   :  { %v290_v15 = vpop.xlane.xlu1 %289 }
 0x528   :  { %v291_v16 = vmul.f32 0.015625, %v290_v15 }
 0x52a   :  { %v292_v18 = vadd.f32 1e-05, %v291_v16 }
 0x52c   :  { %551 = vrsqrt.f32 %v292_v18 }
 0x539   :  { %v552_v20 = vpop.eup %551 }
 0x53a   :  { %v294_v22 = vmul.f32 %v552_v20, %v287_v5 }
 0x53c   :  { %v299_v23 = vmul.f32 %v298_v19, %v294_v22 }
 0x53e   :  { %v304_v24 = vadd.f32 %v303_v21, %v299_v23 }
 0x540   :  { %v305_v25 = vmax.f32 %v304_v24, 0.0 }
 0x542   :  { %v323_v26 = vpack.c.bf16 %v305_v25, %v305_v25 }
 0x544   :  { %521 = vmatmul.mubr.bf16.vlgmr.msra.gmra.mxu0 %v323_v26 }
 0x604   :  { %v412_v8 = vpop.f32.mrf.mxu0 }
 0x605   :  { %v413_v28 = vadd.f32 %v446_v27, %v412_v8 }
 0x606   :  { %v522_v29 = vpop.f32.mrf.mxu0 }
 0x607   :  { %418 = vst.msk [vmem:[#allocation7] sm:$0xff] %vm57_vm0, %v413_v28 }
 0x608   :  { %v415_v17 = vpop.f32.mrf.mxu0 }
 0x609   :  { %604 = shalt.err (!%p601_p0)
}
 0x60a   :  { %428 = dma.vmem_to_hbm [thread:$0]  %s426_s25, 128, %s794_s8, [#allocation4]   ;;  %v523_v30 = vpop.f32.mrf.mxu0 }
 0x60b   :  { %617 = dma.done.wait [#allocation4], 128  }
 0x60c   :  { %618 = vsyncadd [#allocation4], 4294967168 }
 0x60d   :  { %432 = vsyncpa [#allocation3], 1 }
 0x60e   :  { %433 = vsyncpa [#allocation6], 1 }
 0x60f   :  { %434 = vsyncpa [#allocation4], 1 }

</bundles_post_ra>
